<compile_context>
chip_gen: v5e
topology: v5e:2x2
jax: 0.10.0
libtpu: 0.0.40
codegen_flags: <defaults>
</compile_context>

<pallas_src>
import functools

import jax
import jax.numpy as jnp
from jax.experimental import pallas as pl
from jax.experimental.pallas import tpu as pltpu


# ---------------------------------------------------------------------------
# pass 1: conv-as-matmul + per-(batch, channel) partial statistics
# ---------------------------------------------------------------------------
def _conv_stats_kernel(xp_ref, w_ref, y_ref, sum_ref, ssq_ref, sum_acc, ssq_acc):
    lt = pl.program_id(1)          # L_out-tile index (reduction axis, "arbitrary")

    @pl.when(lt == 0)
    def _init():
        sum_acc[...] = jnp.zeros_like(sum_acc)
        ssq_acc[...] = jnp.zeros_like(ssq_acc)

    # (C, C*k) @ (C*k, tile_l) -> (C, tile_l) on the MXU, f32 accumulation.
    y = jnp.dot(w_ref[...], xp_ref[...], preferred_element_type=jnp.float32)
    y_ref[...] = y.astype(y_ref.dtype)

    # Lane-wide accumulators: pure VALU adds every step; the cross-lane (XLU)
    # reduce is paid exactly once per batch in the finalize block below.
    sum_acc[...] += y
    ssq_acc[...] += y * y

    @pl.when(lt == pl.num_programs(1) - 1)
    def _finalize():
        sum_ref[...] = jnp.sum(sum_acc[...], axis=1, keepdims=True)
        ssq_ref[...] = jnp.sum(ssq_acc[...], axis=1, keepdims=True)


# ---------------------------------------------------------------------------
# pass 2: per-channel affine streamer  out = y * scale + shift
# ---------------------------------------------------------------------------
def _affine_kernel(y_ref, scale_ref, shift_ref, o_ref):
    y = y_ref[...].astype(jnp.float32)
    o_ref[...] = (y * scale_ref[...] + shift_ref[...]).astype(o_ref.dtype)


def _vmem_budgets():
    """Returns (tiling byte budget, compiler vmem limit) from the chip's VMEM size."""
    try:
        cap = int(pltpu.get_tpu_info().vmem_capacity_bytes)   # 128 MiB v5e/v6e, 64 MiB v7x
    except Exception:
        cap = 64 << 20                                        # conservative v7x-safe fallback
    return int(cap * 0.55), int(cap * 0.75)


# ---------------------------------------------------------------------------
# wrapper
# ---------------------------------------------------------------------------
def condense_tiny_forward(x, w, gamma, beta, *, scale_rate, eps=1e-5,
                          conv_dtype=None, intermediate_dtype=None,
                          max_tile_lanes=None):
    """x: (N, C, L) f32; w: (C, C, scale_rate); gamma/beta: (C,). Returns (N, C, L_out) f32."""
    N, C, L = x.shape
    k = scale_rate
    L_out = (L - k) // k + 1

    conv_dt = jnp.dtype(conv_dtype) if conv_dtype is not None else jnp.dtype(jnp.float32)
    y_dt = jnp.dtype(intermediate_dtype) if intermediate_dtype is not None else jnp.dtype(jnp.float32)
    db, yb = conv_dt.itemsize, y_dt.itemsize

    # --- lane-tile sizing from a per-generation VMEM byte budget ---------------------
    budget, vmem_limit = _vmem_budgets()
    per_lane = max(
        2 * C * k * db + 2 * C * yb + 2 * C * 4,   # pass 1: patches(x2) + y(x2) + stats scratch
        2 * C * yb + 2 * C * 4,                    # pass 2: y in (x2) + out (x2)
    )
    fixed = 2 * C * (C * k) * db + 8 * C * 4 + (64 << 10)   # weight (double-buffered) + slack
    max_tile = (budget - fixed) // per_lane
    max_tile = max(128, (int(max_tile) // 128) * 128)
    max_tile = min(max_tile, 8192)
    if max_tile_lanes is not None:                 # test hook: force the multi-tile path
        max_tile = min(max_tile, int(max_tile_lanes))

    if L_out <= max_tile:
        tile_l, T_l, L_pad = L_out, 1, L_out       # single full-row tile, no padding
    else:
        tile_l = max_tile                          # multiple of 128 -> lane-dense blocks
        T_l = (L_out + tile_l - 1) // tile_l
        L_pad = T_l * tile_l

    # --- per-batch im2col (one XLA reshuffle); bf16 cast BEFORE it halves that traffic
    xs = x[:, :, : L_out * k]
    if conv_dtype is not None:
        xs = xs.astype(conv_dt)
    # patches[n, c*k + j, l] = x[n, c, l*k + j]
    patches = xs.reshape(N, C, L_out, k).transpose(0, 1, 3, 2).reshape(N, C * k, L_out)
    if L_pad != L_out:
        # zero columns -> y == 0 there -> no contribution to sum/ssq (count uses real L_out)
        patches = jnp.pad(patches, ((0, 0), (0, 0), (0, L_pad - L_out)))
    w_flat = w.reshape(C, C * k).astype(conv_dt)

    # --- pass 1: conv + per-batch partial sum / sumsq, y written in final layout ------
    y, s_part, q_part = pl.pallas_call(
        _conv_stats_kernel,
        out_shape=(
            jax.ShapeDtypeStruct((N, C, L_pad), y_dt),
            jax.ShapeDtypeStruct((N, C, 1), jnp.float32),
            jax.ShapeDtypeStruct((N, C, 1), jnp.float32),
        ),
        grid_spec=pltpu.PrefetchScalarGridSpec(
            num_scalar_prefetch=0,
            grid=(N, T_l),
            in_specs=[
                pl.BlockSpec((None, C * k, tile_l), lambda n, t: (n, 0, t)),
                pl.BlockSpec((C, C * k), lambda n, t: (0, 0)),
            ],
            out_specs=[
                pl.BlockSpec((None, C, tile_l), lambda n, t: (n, 0, t)),
                pl.BlockSpec((None, C, 1), lambda n, t: (n, 0, 0)),
                pl.BlockSpec((None, C, 1), lambda n, t: (n, 0, 0)),
            ],
            scratch_shapes=[
                pltpu.VMEM((C, tile_l), jnp.float32),
                pltpu.VMEM((C, tile_l), jnp.float32),
            ],
        ),
        compiler_params=pltpu.CompilerParams(
            dimension_semantics=("parallel", "arbitrary"),   # batch shardable on v7x 2-TC
            vmem_limit_bytes=vmem_limit,
        ),
    )(patches, w_flat)

    # --- tiny (C,1) stats glue in plain JAX (hoisted out of all per-tile loops) -------
    count = jnp.float32(N * L_out)
    s = jnp.sum(s_part, axis=0)                    # (C, 1)
    q = jnp.sum(q_part, axis=0)                    # (C, 1)
    mean = s / count
    var = jnp.maximum(q / count - mean * mean, 0.0)   # biased var, clamped (review concern)
    inv_std = jax.lax.rsqrt(var + eps)
    scale = gamma.reshape(C, 1) * inv_std
    shift = beta.reshape(C, 1) - mean * scale

    # --- pass 2: out = y * scale + shift, native (N, C, L_out) layout, in place -------
    alias = {0: 0} if y_dt == jnp.dtype(jnp.float32) else {}
    out = pl.pallas_call(
        _affine_kernel,
        out_shape=jax.ShapeDtypeStruct((N, C, L_pad), jnp.float32),
        grid_spec=pltpu.PrefetchScalarGridSpec(
            num_scalar_prefetch=0,
            grid=(N, T_l),
            in_specs=[
                pl.BlockSpec((None, C, tile_l), lambda n, t: (n, 0, t)),
                pl.BlockSpec((C, 1), lambda n, t: (0, 0)),
                pl.BlockSpec((C, 1), lambda n, t: (0, 0)),
            ],
            out_specs=pl.BlockSpec((None, C, tile_l), lambda n, t: (n, 0, t)),
        ),
        input_output_aliases=alias,
        compiler_params=pltpu.CompilerParams(
            dimension_semantics=("parallel", "parallel"),
            vmem_limit_bytes=vmem_limit,
        ),
    )(y, scale, shift)

    if L_pad != L_out:
        out = out[:, :, :L_out]    # only when a remainder tile forced lane padding
    return out


# ---------------------------------------------------------------------------
# pure-JAX reference (Conv1d stride=k no bias -> training-mode BatchNorm1d)
# ---------------------------------------------------------------------------
def _reference(x, w, gamma, beta, scale_rate, eps=1e-5):
    N, C, L = x.shape
    k = scale_rate
    L_out = (L - k) // k + 1
    patches = (
        x[:, :, : L_out * k]
        .reshape(N, C, L_out, k)
        .transpose(0, 1, 3, 2)
        .reshape(N, C * k, L_out)
    )
    y = jnp.einsum("oc,ncl->nol", w.reshape(C, C * k), patches)
    mean = y.mean(axis=(0, 2), keepdims=True)
    var = ((y - mean) ** 2).mean(axis=(0, 2), keepdims=True)
    return (y - mean) / jnp.sqrt(var + eps) * gamma.reshape(1, C, 1) + beta.reshape(1, C, 1)


if __name__ == "__main__":
    key = jax.random.PRNGKey(0)

    # --- small shapes consistent with the module: N=2, C=4, L=16, scale_rate=2 ---
    N, C, L, k = 2, 4, 16, 2
    kx, kw, kg, kb = jax.random.split(key, 4)
    x = jax.random.normal(kx, (N, C, L), dtype=jnp.float32)
    w = jax.random.normal(kw, (C, C, k), dtype=jnp.float32) * 0.1       # Conv1d weight
    gamma = 1.0 + 0.1 * jax.random.normal(kg, (C,), dtype=jnp.float32)
    beta = 0.1 * jax.random.normal(kb, (C,), dtype=jnp.float32)

    # f32 path: matches PyTorch f32 semantics
    fwd = jax.jit(functools.partial(condense_tiny_forward, scale_rate=k))
    out = jax.block_until_ready(fwd(x, w, gamma, beta))
    ref = _reference(x, w, gamma, beta, k)
    assert out.shape == (N, C, L // k), out.shape
    assert jnp.allclose(out, ref, atol=1e-4, rtol=1e-4), float(jnp.max(jnp.abs(out - ref)))

    # bf16 conv-operand path (halves im2col + conv-read HBM traffic)
    fwd_bf16 = jax.jit(functools.partial(condense_tiny_forward, scale_rate=k,
                                         conv_dtype=jnp.bfloat16))
    out_b = jax.block_until_ready(fwd_bf16(x, w, gamma, beta))
    x_r = x.astype(jnp.bfloat16).astype(jnp.float32)
    w_r = w.astype(jnp.bfloat16).astype(jnp.float32)
    ref_b = _reference(x_r, w_r, gamma, beta, k)
    assert jnp.allclose(out_b, ref_b, atol=1e-3, rtol=1e-3), float(jnp.max(jnp.abs(out_b - ref_b)))

    # multi-tile + remainder-padding path (force a small tile so T_l > 1)
    N2, C2, L2, k2 = 2, 8, 602, 2          # L_out = 301 -> padded to 384 with tile 128
    kx2, kw2, kg2, kb2 = jax.random.split(jax.random.PRNGKey(1), 4)
    x2 = jax.random.normal(kx2, (N2, C2, L2), dtype=jnp.float32)
    w2 = jax.random.normal(kw2, (C2, C2, k2), dtype=jnp.float32) * 0.1
    g2 = 1.0 + 0.1 * jax.random.normal(kg2, (C2,), dtype=jnp.float32)
    b2 = 0.1 * jax.random.normal(kb2, (C2,), dtype=jnp.float32)
    fwd_tiled = jax.jit(functools.partial(condense_tiny_forward, scale_rate=k2,
                                          max_tile_lanes=128))
    out2 = jax.block_until_ready(fwd_tiled(x2, w2, g2, b2))
    ref2 = _reference(x2, w2, g2, b2, k2)
    assert out2.shape == ref2.shape, (out2.shape, ref2.shape)
    assert jnp.allclose(out2, ref2, atol=1e-3, rtol=1e-3), float(jnp.max(jnp.abs(out2 - ref2)))

    # bf16 y-intermediate path (halves pass-1 write / pass-2 read traffic)
    fwd_yb = jax.jit(functools.partial(condense_tiny_forward, scale_rate=k,
                                       intermediate_dtype=jnp.bfloat16))
    out_y = jax.block_until_ready(fwd_yb(x, w, gamma, beta))
    assert jnp.allclose(out_y, ref, atol=5e-2, rtol=5e-2), float(jnp.max(jnp.abs(out_y - ref)))

    print("KERNEL_OK")
</pallas_src>

<mosaic_0001>
module attributes {stable_mosaic.version = 11 : i64} {
  func.func @_conv_stats_kernel(%arg0: i32, %arg1: i32, %arg2: memref<1x8x8xf32, #tpu.memory_space<vmem>>, %arg3: memref<4x8xf32, #tpu.memory_space<vmem>>, %arg4: memref<1x4x8xf32, #tpu.memory_space<vmem>>, %arg5: memref<1x4x1xf32, #tpu.memory_space<vmem>>, %arg6: memref<1x4x1xf32, #tpu.memory_space<vmem>>, %arg7: memref<4x8xf32, #tpu.memory_space<vmem>>, %arg8: memref<4x8xf32, #tpu.memory_space<vmem>>) attributes {dimension_semantics = [#tpu.dimension_semantics<parallel>, #tpu.dimension_semantics<arbitrary>], iteration_bounds = array<i64: 2, 1>, scalar_prefetch = 0 : i64, scratch_operands = 2 : i64, tpu.core_type = #tpu.core_type<tc>, window_params = [{transform_indices = @transform_0, window_bounds = array<i64: 1, 8, 8>}, {pipeline_mode = #tpu.pipeline_mode<synchronous>, transform_indices = @transform_1, window_bounds = array<i64: 4, 8>}, {transform_indices = @transform_2, window_bounds = array<i64: 1, 4, 8>}, {transform_indices = @transform_3, window_bounds = array<i64: 1, 4, 1>}, {transform_indices = @transform_4, window_bounds = array<i64: 1, 4, 1>}]} {
    %c0_i32 = arith.constant 0 : i32
    %0 = arith.cmpi eq, %arg1, %c0_i32 : i32
    %1 = arith.extui %0 : i1 to i32
    %c0_i32_0 = arith.constant 0 : i32
    %2 = arith.cmpi ne, %1, %c0_i32_0 : i32
    scf.if %2 {
      %cst_18 = arith.constant 0.000000e+00 : f32
      %20 = vector.broadcast %cst_18 : f32 to vector<4x8xf32>
      %c0_19 = arith.constant 0 : index
      %c0_20 = arith.constant 0 : index
      %21 = vector.load %arg7[%c0_19, %c0_20] : memref<4x8xf32, #tpu.memory_space<vmem>>, vector<4x8xf32>
      tpu.vector_store %arg7[%c0_19, %c0_20], %20 {strides = array<i32>} : memref<4x8xf32, #tpu.memory_space<vmem>>, vector<4x8xf32>,
      %cst_21 = arith.constant 0.000000e+00 : f32
      %22 = vector.broadcast %cst_21 : f32 to vector<4x8xf32>
      %c0_22 = arith.constant 0 : index
      %c0_23 = arith.constant 0 : index
      %23 = vector.load %arg8[%c0_22, %c0_23] : memref<4x8xf32, #tpu.memory_space<vmem>>, vector<4x8xf32>
      tpu.vector_store %arg8[%c0_22, %c0_23], %22 {strides = array<i32>} : memref<4x8xf32, #tpu.memory_space<vmem>>, vector<4x8xf32>,
    } else {
    }
    %c0 = arith.constant 0 : index
    %c0_1 = arith.constant 0 : index
    %3 = vector.load %arg3[%c0, %c0_1] : memref<4x8xf32, #tpu.memory_space<vmem>>, vector<4x8xf32>
    %c0_2 = arith.constant 0 : index
    %c0_3 = arith.constant 0 : index
    %c0_4 = arith.constant 0 : index
    %4 = vector.load %arg2[%c0_2, %c0_3, %c0_4] : memref<1x8x8xf32, #tpu.memory_space<vmem>>, vector<1x8x8xf32>
    %5 = vector.shape_cast %4 : vector<1x8x8xf32> to vector<8x8xf32>
    %cst = arith.constant dense<0.000000e+00> : vector<4x8xf32>
    %6 = tpu.matmul %3, %5, %cst {dimension_numbers = #tpu.dot_dimension_numbers<[1], [0], [0], [1], [0, 0, 1, 1], [], []>} : vector<4x8xf32>, vector<8x8xf32>, vector<4x8xf32> -> vector<4x8xf32>
    %c0_5 = arith.constant 0 : index
    %c0_6 = arith.constant 0 : index
    %c0_7 = arith.constant 0 : index
    %7 = vector.load %arg4[%c0_5, %c0_6, %c0_7] : memref<1x4x8xf32, #tpu.memory_space<vmem>>, vector<1x4x8xf32>
    %8 = vector.shape_cast %7 : vector<1x4x8xf32> to vector<4x8xf32>
    %9 = vector.shape_cast %6 : vector<4x8xf32> to vector<1x4x8xf32>
    tpu.vector_store %arg4[%c0_5, %c0_6, %c0_7], %9 {strides = array<i32>} : memref<1x4x8xf32, #tpu.memory_space<vmem>>, vector<1x4x8xf32>,
    %c0_8 = arith.constant 0 : index
    %c0_9 = arith.constant 0 : index
    %10 = vector.load %arg7[%c0_8, %c0_9] : memref<4x8xf32, #tpu.memory_space<vmem>>, vector<4x8xf32>
    %11 = arith.addf %10, %6 : vector<4x8xf32>
    %c0_10 = arith.constant 0 : index
    %c0_11 = arith.constant 0 : index
    %12 = vector.load %arg7[%c0_10, %c0_11] : memref<4x8xf32, #tpu.memory_space<vmem>>, vector<4x8xf32>
    tpu.vector_store %arg7[%c0_10, %c0_11], %11 {strides = array<i32>} : memref<4x8xf32, #tpu.memory_space<vmem>>, vector<4x8xf32>,
    %c0_12 = arith.constant 0 : index
    %c0_13 = arith.constant 0 : index
    %13 = vector.load %arg8[%c0_12, %c0_13] : memref<4x8xf32, #tpu.memory_space<vmem>>, vector<4x8xf32>
    %14 = arith.mulf %6, %6 : vector<4x8xf32>
    %15 = arith.addf %13, %14 : vector<4x8xf32>
    %c0_14 = arith.constant 0 : index
    %c0_15 = arith.constant 0 : index
    %16 = vector.load %arg8[%c0_14, %c0_15] : memref<4x8xf32, #tpu.memory_space<vmem>>, vector<4x8xf32>
    tpu.vector_store %arg8[%c0_14, %c0_15], %15 {strides = array<i32>} : memref<4x8xf32, #tpu.memory_space<vmem>>, vector<4x8xf32>,
    %c0_i32_16 = arith.constant 0 : i32
    %17 = arith.cmpi eq, %arg1, %c0_i32_16 : i32
    %18 = arith.extui %17 : i1 to i32
    %c0_i32_17 = arith.constant 0 : i32
    %19 = arith.cmpi ne, %18, %c0_i32_17 : i32
    scf.if %19 {
      %c0_18 = arith.constant 0 : index
      %c0_19 = arith.constant 0 : index
      %20 = vector.load %arg7[%c0_18, %c0_19] : memref<4x8xf32, #tpu.memory_space<vmem>>, vector<4x8xf32>
      %cst_20 = arith.constant dense<0.000000e+00> : vector<4xf32>
      %21 = vector.multi_reduction <add>, %20, %cst_20 [1] : vector<4x8xf32> to vector<4xf32>
      %22 = vector.shape_cast %21 : vector<4xf32> to vector<4x1xf32>
      %c0_21 = arith.constant 0 : index
      %c0_22 = arith.constant 0 : index
      %c0_23 = arith.constant 0 : index
      %23 = vector.load %arg5[%c0_21, %c0_22, %c0_23] : memref<1x4x1xf32, #tpu.memory_space<vmem>>, vector<1x4x1xf32>
      %24 = vector.shape_cast %23 : vector<1x4x1xf32> to vector<4x1xf32>
      %25 = vector.shape_cast %22 : vector<4x1xf32> to vector<1x4x1xf32>
      tpu.vector_store %arg5[%c0_21, %c0_22, %c0_23], %25 {strides = array<i32>} : memref<1x4x1xf32, #tpu.memory_space<vmem>>, vector<1x4x1xf32>,
      %c0_24 = arith.constant 0 : index
      %c0_25 = arith.constant 0 : index
      %26 = vector.load %arg8[%c0_24, %c0_25] : memref<4x8xf32, #tpu.memory_space<vmem>>, vector<4x8xf32>
      %cst_26 = arith.constant dense<0.000000e+00> : vector<4xf32>
      %27 = vector.multi_reduction <add>, %26, %cst_26 [1] : vector<4x8xf32> to vector<4xf32>
      %28 = vector.shape_cast %27 : vector<4xf32> to vector<4x1xf32>
      %c0_27 = arith.constant 0 : index
      %c0_28 = arith.constant 0 : index
      %c0_29 = arith.constant 0 : index
      %29 = vector.load %arg6[%c0_27, %c0_28, %c0_29] : memref<1x4x1xf32, #tpu.memory_space<vmem>>, vector<1x4x1xf32>
      %30 = vector.shape_cast %29 : vector<1x4x1xf32> to vector<4x1xf32>
      %31 = vector.shape_cast %28 : vector<4x1xf32> to vector<1x4x1xf32>
      tpu.vector_store %arg6[%c0_27, %c0_28, %c0_29], %31 {strides = array<i32>} : memref<1x4x1xf32, #tpu.memory_space<vmem>>, vector<1x4x1xf32>,
    } else {
    }
    return
  }
  func.func @transform_0(%arg0: i32, %arg1: i32) -> (i32, i32, i32) {
    %c0_i32 = arith.constant 0 : i32
    %c0_i32_0 = arith.constant 0 : i32
    return %arg0, %c0_i32, %arg1 : i32, i32, i32
  }
  func.func @transform_1(%arg0: i32, %arg1: i32) -> (i32, i32) {
    %c0_i32 = arith.constant 0 : i32
    %c0_i32_0 = arith.constant 0 : i32
    %c0_i32_1 = arith.constant 0 : i32
    return %c0_i32, %c0_i32_0 : i32, i32
  }
  func.func @transform_2(%arg0: i32, %arg1: i32) -> (i32, i32, i32) {
    %c0_i32 = arith.constant 0 : i32
    %c0_i32_0 = arith.constant 0 : i32
    return %arg0, %c0_i32, %arg1 : i32, i32, i32
  }
  func.func @transform_3(%arg0: i32, %arg1: i32) -> (i32, i32, i32) {
    %c0_i32 = arith.constant 0 : i32
    %c0_i32_0 = arith.constant 0 : i32
    %c0_i32_1 = arith.constant 0 : i32
    return %arg0, %c0_i32, %c0_i32_0 : i32, i32, i32
  }
  func.func @transform_4(%arg0: i32, %arg1: i32) -> (i32, i32, i32) {
    %c0_i32 = arith.constant 0 : i32
    %c0_i32_0 = arith.constant 0 : i32
    %c0_i32_1 = arith.constant 0 : i32
    return %arg0, %c0_i32, %c0_i32_0 : i32, i32, i32
  }
}

module attributes {stable_mosaic.version = 11 : i64} {
  func.func @_affine_kernel(%arg0: i32, %arg1: i32, %arg2: memref<1x4x8xf32, #tpu.memory_space<vmem>>, %arg3: memref<4x1xf32, #tpu.memory_space<vmem>>, %arg4: memref<4x1xf32, #tpu.memory_space<vmem>>, %arg5: memref<1x4x8xf32, #tpu.memory_space<vmem>>) attributes {dimension_semantics = [#tpu.dimension_semantics<parallel>, #tpu.dimension_semantics<parallel>], iteration_bounds = array<i64: 2, 1>, scalar_prefetch = 0 : i64, scratch_operands = 0 : i64, tpu.core_type = #tpu.core_type<tc>, window_params = [{transform_indices = @transform_0, window_bounds = array<i64: 1, 4, 8>}, {pipeline_mode = #tpu.pipeline_mode<synchronous>, transform_indices = @transform_1, window_bounds = array<i64: 4, 1>}, {pipeline_mode = #tpu.pipeline_mode<synchronous>, transform_indices = @transform_2, window_bounds = array<i64: 4, 1>}, {transform_indices = @transform_3, window_bounds = array<i64: 1, 4, 8>}]} {
    %c0 = arith.constant 0 : index
    %c0_0 = arith.constant 0 : index
    %c0_1 = arith.constant 0 : index
    %0 = vector.load %arg2[%c0, %c0_0, %c0_1] : memref<1x4x8xf32, #tpu.memory_space<vmem>>, vector<1x4x8xf32>
    %1 = vector.shape_cast %0 : vector<1x4x8xf32> to vector<4x8xf32>
    %c0_2 = arith.constant 0 : index
    %c0_3 = arith.constant 0 : index
    %2 = vector.load %arg3[%c0_2, %c0_3] : memref<4x1xf32, #tpu.memory_space<vmem>>, vector<4x1xf32>
    %3 = vector.broadcast %2 : vector<4x1xf32> to vector<4x8xf32>
    %4 = arith.mulf %1, %3 : vector<4x8xf32>
    %c0_4 = arith.constant 0 : index
    %c0_5 = arith.constant 0 : index
    %5 = vector.load %arg4[%c0_4, %c0_5] : memref<4x1xf32, #tpu.memory_space<vmem>>, vector<4x1xf32>
    %6 = vector.broadcast %5 : vector<4x1xf32> to vector<4x8xf32>
    %7 = arith.addf %4, %6 : vector<4x8xf32>
    %c0_6 = arith.constant 0 : index
    %c0_7 = arith.constant 0 : index
    %c0_8 = arith.constant 0 : index
    %8 = vector.load %arg5[%c0_6, %c0_7, %c0_8] : memref<1x4x8xf32, #tpu.memory_space<vmem>>, vector<1x4x8xf32>
    %9 = vector.shape_cast %8 : vector<1x4x8xf32> to vector<4x8xf32>
    %10 = vector.shape_cast %7 : vector<4x8xf32> to vector<1x4x8xf32>
    tpu.vector_store %arg5[%c0_6, %c0_7, %c0_8], %10 {strides = array<i32>} : memref<1x4x8xf32, #tpu.memory_space<vmem>>, vector<1x4x8xf32>,
    return
  }
  func.func @transform_0(%arg0: i32, %arg1: i32) -> (i32, i32, i32) {
    %c0_i32 = arith.constant 0 : i32
    %c0_i32_0 = arith.constant 0 : i32
    return %arg0, %c0_i32, %arg1 : i32, i32, i32
  }
  func.func @transform_1(%arg0: i32, %arg1: i32) -> (i32, i32) {
    %c0_i32 = arith.constant 0 : i32
    %c0_i32_0 = arith.constant 0 : i32
    %c0_i32_1 = arith.constant 0 : i32
    return %c0_i32, %c0_i32_0 : i32, i32
  }
  func.func @transform_2(%arg0: i32, %arg1: i32) -> (i32, i32) {
    %c0_i32 = arith.constant 0 : i32
    %c0_i32_0 = arith.constant 0 : i32
    %c0_i32_1 = arith.constant 0 : i32
    return %c0_i32, %c0_i32_0 : i32, i32
  }
  func.func @transform_3(%arg0: i32, %arg1: i32) -> (i32, i32, i32) {
    %c0_i32 = arith.constant 0 : i32
    %c0_i32_0 = arith.constant 0 : i32
    return %arg0, %c0_i32, %arg1 : i32, i32, i32
  }
}

</mosaic_0001>

<bundles_post_ra>
// kernel: condense_tiny_forward.3
= control target key start
LH: loop header
LB: loop body
LE: loop exit
PB: predicated region body
PF: predicated region fallthrough
CT: control target
= control target key end

     0   :  { %8 = vsyncpa [#allocation3], 0  ;;  %s657_s0 = inlined_call_operand.hbm [shape: f32[2,4,8], index: 0, kind: input, shape index: {}, may-alias: {0,3}]   ;;  %s658_s1 = inlined_call_operand.vmem [shape: f32[4,1], index: 1, kind: input, shape index: {}]   ;;  %s659_s2 = inlined_call_operand.vmem [shape: f32[4,1], index: 2, kind: input, shape index: {}]   ;;  %s660_s3 = inlined_call_operand.hbm [shape: f32[2,4,8], index: 3, kind: output, shape index: {}, may-alias: {0,3}]  }
   0x1   :  { %10 = vsyncpa [#allocation3 + $0x1], 0 }
   0x2   :  { %11 = vsyncpa [#allocation4], 0 }
   0x3   :  { %13 = vsyncpa [#allocation4 + $0x1], 0  ;;  %s531_s12 = smov 0   ;;  %s533_s13 = smov 0  }
   0x4   :  { %s535_s14 = smov 0   ;;  %s537_s15 = smov 0  }
   0x5   :  { %s539_s16 = smov 0   ;;  %s541_s17 = smov 0  }
   0x6 LB: > { %s319_s18 = sadd.s32 4294967295, %s508_s17   ;;  %s320_s19 = sadd.s32 4294967294, %s508_s17   ;;  %s508_s17 = sphi %s541_s17, %s19_s17   ;;  %s504_s16 = sphi %s539_s16, %s669_s16   ;;  %s500_s15 = sphi %s537_s15, %s668_s15   ;;  %s496_s14 = sphi %s535_s14, %s667_s14   ;;  %s492_s13 = sphi %s533_s13, %s666_s13   ;;  %s488_s12 = sphi %s531_s12, %s665_s12  }
   0x7   : > { %s31_s20 = sadd.s32 1, %s504_s16  ;;  %s40_s21 = sadd.s32 1, %s496_s14 }
   0x8   : > { %p33_p0 = scmp.ge.s32.totalorder %s31_s20, 2  ;;  %p47_p1 = scmp.ne.s32.totalorder %s496_s14, %s492_s13 }
   0x9   : > { %p48_p2 = scmp.eq.s32.totalorder %s508_s17, 0  ;;  %p53_p3 = scmp.ne.s32.totalorder %s492_s13, %s488_s12 }
   0xa   : > { %s671_s20 = smov (%p33_p0, %s31_s20), 0  ;;  %p54_p5 = scmp.eq.s32.totalorder %s319_s18, 0 }
   0xb   : > { %p572_p4 = por %p48_p2, %p47_p1  ;;  %s35_s23 = ssub.s32 %s504_s16, %s671_s20 }
   0xc   : > { %p121_p6 = scmp.eq.s32.totalorder %s319_s18, 1  ;;  %p38_p7 = scmp.eq.s32.totalorder %s35_s23, 0 }
   0xd   : > { %p578_p8 = por %p54_p5, %p53_p3  ;;  %p127_p10 = scmp.eq.s32.totalorder %s320_s19, 1 }
   0xe   : > { %p582_p9 = por %p121_p6, %p47_p1  ;;  %p322_p12 = scmp.ge.s32.totalorder %s508_s17, 2 }
   0xf   : > { %s587_s26 = scalar_select %p38_p7, %s496_s14, %s40_s21  }
  0x10   : > { %p589_p11 = por %p127_p10, %p53_p3  ;;  %p344_p13 = scmp.lt.s32.totalorder %s508_s17, 2 }
  0x11   : > { %s153_s28 = sand.u32 1, %s496_s14   ;;  %s324_s30 = sshll.u32 %s504_s16, 2 }
  0x12   : > { %s323_s29 = sshll.u32 %s153_s28, 2  ;;  %s162_s6 = scalar_lea.hbm %s657_s0, %s324_s30 }
  0x13   : > { %s157_s7 = scalar_lea.vmem [#allocation2], %s323_s29  ;;  %s164_s9 = sshll.u32 %s162_s6, 4  ;;  %s165_s9 = int_to_ptr.hbm [resolvable:$true] %s164_s9 }
  0x14   : > { %s166_s8 = sshll.u32 %s157_s7, 4  ;;  %p337_p0 = pnand %p344_p13, %p572_p4  ;;  %s167_s8 = int_to_ptr.vmem [resolvable:$true] %s166_s8 }
  0x15   : > { %p325_p1 = scmp.ge.s32.totalorder %s508_s17, 1  ;;  %p171_p2 = scmp.lt.s32.totalorder %s508_s17, 3 }
  0x16   : > { %s154_s10 = scalar_lea.sflag [#allocation3], %s153_s28 }
  0x17   : > { %339 = dma.hbm_to_vmem [thread:$0]  (!%p337_p0), %s165_s9, 64, %s167_s8, %s154_s10  }
  0x18   : > { %p172_p3 = pnand %p325_p1, %p171_p2 }
  0x19   : > { %s605_s11 = sand.u32 (!%p172_p3), 1, %s492_s13  }
  0x1a   : > { %175 = sbr.rel (%p172_p3) target bundleno = 162 (0xa2), region = 32  ;;  %s326_s18 = sshll.u32 (!%p172_p3), %s605_s11, 2 }
  0x1b   : > { %s178_s19 = scalar_lea.sflag (!%p172_p3), [#allocation3], %s605_s11  ;;  %s181_s21 = scalar_lea.vmem (!%p172_p3), [#allocation2], %s326_s18 }
  0x1f   : > { %479 = dma.done.wait (%p578_p8), %s178_s19, 64  }
  0x20   : > { %481 = vsyncadd (%p578_p8), %s178_s19, 4294967232  ;;  %v510_v0 = vmov 0   ;;  %v206_v1 = vld [vmem:[%s658_s1] sm:$0xf]  ;;  %s329_s30 = sshll.u32 %s500_s15, 2  ;;  %s204_s6 = scalar_lea.vmem [#allocation5], %s326_s18 }
  0x21   : > { %395 = vset.pattern.permute.xlu0 %v510_v0  ;;  %v213_v2 = vld [vmem:[%s659_s2] sm:$0xf]  ;;  %s234_s24 = scalar_lea.hbm %s660_s3, %s329_s30  ;;  %s236_s7 = sshll.u32 %s204_s6, 4  ;;  %vm220_vm0 = vcmask 60416   ;;  %s237_s7 = int_to_ptr.vmem [resolvable:$true] %s236_s7 }
  0x22   : > { %209 = vperm.xlu0 %395, %v206_v1   ;;  %v205_v4 = vld [vmem:[%s181_s21] sm:$0xf]  ;;  %s238_s8 = sshll.u32 %s234_s24, 4  ;;  %s223_s9 = scalar_lea.sflag [#allocation4], %s605_s11  ;;  %s239_s8 = int_to_ptr.hbm [resolvable:$true] %s238_s8 }
  0x23   : > { %s440_s10 = sshra.s32 %s239_s8, 4  ;;  %s446_s18 = scalar_lea.hbm %s660_s3, 8  ;;  %s441_s10 = int_to_ptr.hbm [resolvable:$true] %s440_s10 }
  0x24   : > { %s442_s15 = scalar_lea.hbm %s441_s10, 4  ;;  %p447_p7 = scmp.lt.s32.totalorder %s441_s10, %s660_s3 }
  0x25   : > { %p443_p4 = scmp.ne.s32.totalorder %s441_s10, %s442_s15  ;;  %p448_p8 = scmp.lt.s32.totalorder %s446_s18, %s442_s15 }
  0x27   : > { %p444_p5 = pnand %p443_p4, %p582_p9  ;;  %p449_p10 = por %p448_p8, %p447_p7 }
  0x29   : > { %p445_p6 = pneg %p444_p5 }
  0x2a   : > { %216 = vperm.xlu0 %395, %v213_v2  }
  0x2b   : > { %p450_p13 = pnand %p449_p10, %p445_p6 }
  0x94   : > { %v210_v3 = vpop.permute.xlu0 %209 }
  0x95   : > { %v212_v5 = vmul.f32 %v210_v3, %v205_v4 }
  0x9c   : > { %v217_v6 = vpop.permute.xlu0 %216 }
  0x9d   : > { %v219_v7 = vadd.f32 %v217_v6, %v212_v5 }
  0x9f   : > { %221 = vst.msk [vmem:[%s204_s6] sm:$0xf] %vm220_vm0, %v219_v7 }
  0xa0   : > { %453 = shalt.err (!%p450_p13)
}
  0xa1   : > { %334 = dma.vmem_to_hbm [thread:$0]  (%p582_p9), %s237_s7, 64, %s239_s8, %s223_s9  }
  0xa2 PF: > { %s250_s11 = sand.u32 1, %s488_s12   ;;  %p341_p0 = pnand %p322_p12, %p589_p11 }
  0xa3   : > { %s251_s28 = scalar_lea.sflag [#allocation4], %s250_s11 }
  0xa4   : > { %p342_p1 = pneg %p341_p0 }
  0xa6   : > { %483 = dma.done.wait (%p342_p1), %s251_s28, 64  }
  0xa7   : > { %485 = vsyncadd (%p342_p1), %s251_s28, 4294967232  ;;  %s19_s17 = sadd.s32 1, %s508_s17   ;;  %s665_s12 = smov %s492_s13 }
  0xa8   : > { %p16_p2 = scmp.ge.s32.totalorder %s19_s17, 4   ;;  %s666_s13 = smov %s496_s14 }
  0xa9   : > { %s667_s14 = smov %s587_s26  ;;  %s668_s15 = smov %s504_s16 }
  0xaa   : > { %s669_s16 = smov %s671_s20  ;;  %18 = sbr.rel (!%p16_p2) target bundleno = 6 (0x6), region = 77 }
  0xaf   :  { %257 = vsyncpa [#allocation3], 1 }
  0xb0   :  { %259 = vsyncpa [#allocation3 + $0x1], 1 }
  0xb1   :  { %260 = vsyncpa [#allocation4], 1 }
  0xb2   :  { %262 = vsyncpa [#allocation4 + $0x1], 1 }

// kernel: condense_tiny_forward.2
= control target key start
LH: loop header
LB: loop body
LE: loop exit
PB: predicated region body
PF: predicated region fallthrough
CT: control target
= control target key end

     0   :  { %10 = vsyncpa [#allocation5], 0  ;;  %s738_s0 = inlined_call_operand.vmem [shape: f32[2,8,8], index: 0, kind: input, shape index: {}]   ;;  %s739_s1 = inlined_call_operand.vmem [shape: f32[4,8], index: 1, kind: input, shape index: {}]   ;;  %s740_s2 = inlined_call_operand.hbm [shape: f32[2,4,8], index: 2, kind: output, shape index: {0}]   ;;  %s741_s3 = inlined_call_operand.vmem [shape: f32[2,4,1], index: 3, kind: output, shape index: {1}]   ;;  %s742_s4 = inlined_call_operand.vmem [shape: f32[2,4,1], index: 4, kind: output, shape index: {2}]  }
   0x1   :  { %12 = vsyncpa [#allocation5 + $0x1], 0  ;;  %s621_s15 = smov 0   ;;  %s623_s16 = smov 0  }
   0x2   :  { %s625_s17 = smov 0   ;;  %s627_s18 = smov 0  }
   0x3   :  { %s629_s19 = smov 0   ;;  %s631_s20 = smov 0  }
   0x4 LB: > { %s445_s21 = sadd.s32 4294967295, %s593_s20   ;;  %s446_s22 = sadd.s32 4294967294, %s593_s20   ;;  %s593_s20 = sphi %s631_s20, %s18_s20   ;;  %s589_s19 = sphi %s629_s19, %s749_s19   ;;  %s585_s18 = sphi %s627_s18, %s748_s18   ;;  %s581_s17 = sphi %s625_s17, %s747_s17   ;;  %s577_s16 = sphi %s623_s16, %s746_s16   ;;  %s573_s15 = sphi %s621_s15, %s745_s15  }
   0x5   : > { %s30_s23 = sadd.s32 1, %s589_s19  ;;  %s88_s24 = sadd.s32 1, %s581_s17 }
   0x6   : > { %p32_p0 = scmp.ge.s32.totalorder %s30_s23, 2  ;;  %p98_p1 = scmp.ne.s32.totalorder %s581_s17, %s577_s16 }
   0x7   : > { %p99_p2 = scmp.eq.s32.totalorder %s445_s21, 1  ;;  %p104_p3 = scmp.ne.s32.totalorder %s577_s16, %s573_s15 }
   0x8   : > { %s751_s23 = smov (%p32_p0, %s30_s23), 0  ;;  %p105_p5 = scmp.eq.s32.totalorder %s446_s22, 1 }
   0x9   : > { %p661_p4 = por %p99_p2, %p98_p1  ;;  %s83_s26 = ssub.s32 %s589_s19, %s751_s23 }
   0xa   : > { %p449_p6 = scmp.ge.s32.totalorder %s593_s20, 1  ;;  %p86_p7 = scmp.eq.s32.totalorder %s83_s26, 0 }
   0xb   : > { %p668_p8 = por %p105_p5, %p104_p3  ;;  %p188_p9 = scmp.lt.s32.totalorder %s593_s20, 3 }
   0xc   : > { %s674_s28 = scalar_select %p86_p7, %s581_s17, %s88_s24  }
   0xd   : > { %p189_p10 = pnand %p449_p6, %p188_p9 }
   0xe   : > { %p224_p11 = scmp.lt.s32.totalorder (!%p189_p10), %s585_s18, 1  ;;  %s209_s10 = sand.u32 (!%p189_p10), 1, %s577_s16  }
   0xf   : > { %192 = sbr.rel (%p189_p10) target bundleno = 288 (0x120), region = 28  ;;  %s450_s11 = sshll.u32 (!%p189_p10), %s209_s10, 2 }
  0x10   : > { %s211_s12 = scalar_lea.vmem (!%p189_p10), [#allocation4], %s450_s11  ;;  %s456_s13 = sshll.u32 (!%p189_p10), %s585_s18, 2 }
  0x11   : > { %s315_s22 = scalar_lea.hbm (!%p189_p10), %s740_s2, %s456_s13  ;;  %s317_s24 = sshll.u32 (!%p189_p10), %s211_s12, 4  ;;  %s318_s24 = int_to_ptr.vmem [resolvable:$true] %s317_s24 }
  0x12   : > { %s319_s26 = sshll.u32 (!%p189_p10), %s315_s22, 4  ;;  %s535_s8 = scalar_lea.hbm (!%p189_p10), %s740_s2, 8  ;;  %s320_s26 = int_to_ptr.hbm [resolvable:$true] %s319_s26 }
  0x13   : > { %s529_s5 = sshra.s32 (!%p189_p10), %s320_s26, 4  ;;  %s530_s5 = int_to_ptr.hbm [resolvable:$true] %s529_s5 }
  0x14   : > { %vm243_vm0 = vcmask 60416   ;;  %s678_s29 = scalar_select %p224_p11, %s585_s18, 1  ;;  %v595_v0 = vmov 0.0   ;;  %v246_v1 = vld [vmem:[%s739_s1] sm:$0xf]  ;;  %vm248_vm1 = vcmask 64512  }
  0x15   : > { %244 = vst.msk [vmem:[#allocation2] sm:$0xf] %vm243_vm0, %v595_v0  ;;  %s531_s6 = scalar_lea.hbm %s530_s5, 4  ;;  %p536_p1 = scmp.lt.s32.totalorder %s530_s5, %s740_s2 }
  0x16   : > { %245 = vst.msk [vmem:[#allocation3] sm:$0xf] %vm243_vm0, %v595_v0  ;;  %s451_s30 = sshll.u32 %s678_s29, 3  ;;  %p532_p12 = scmp.ne.s32.totalorder %s530_s5, %s531_s6 }
  0x17   : > { %s230_s7 = scalar_lea.vmem %s738_s0, %s451_s30  ;;  %s296_s30 = scalar_lea.sflag [#allocation5], %s209_s10 }
  0x18   : > { %v247_v2 = vld [vmem:[%s230_s7] sm:$0xff]  ;;  %p533_p13 = pnand %p532_p12, %p661_p4  ;;  %p537_p2 = scmp.lt.s32.totalorder %s535_s8, %s531_s6 }
  0x19   : > { %267 = vmatpush.msra.mxu0 %v247_v2 }
  0x1a   : > { %454 = vmatmul.msk.f32.vlgmr.msra.gmra.mxu0 %vm248_vm1, %v246_v1  ;;  %p534_p0 = pneg %p533_p13  ;;  %p538_p3 = por %p537_p2, %p536_p1 }
  0x1c   : > { %v274_v3 = vld [vmem:[#allocation2] sm:$0xf]  ;;  %p539_p5 = pnand %p538_p3, %p534_p0 }
  0x1d   : > { %v277_v5 = vld [vmem:[#allocation3] sm:$0xf] }
  0x97   : > { %v269_v4 = vpop.f32.mrf.mxu0 }
  0x98   : > { %273 = vst.msk [vmem:[%s211_s12] sm:$0xf] %vm243_vm0, %v269_v4  ;;  %v275_v6 = vadd.f32 %v274_v3, %v269_v4  ;;  %v278_v7 = vmul.f32 %v269_v4, %v269_v4 }
  0x9a   : > { %276 = vst.msk [vmem:[#allocation2] sm:$0xf] %vm243_vm0, %v275_v6  ;;  %v279_v8 = vadd.f32 %v278_v7, %v277_v5 }
  0x9c   : > { %280 = vst.msk [vmem:[#allocation3] sm:$0xf] %vm243_vm0, %v279_v8 }
  0x9d   : > { %542 = shalt.err (!%p539_p5)
}
  0x9e   : > { %459 = dma.vmem_to_hbm [thread:$0]  (%p661_p4), %s318_s24, 64, %s320_s26, %s296_s30   ;;  %vm288_vm2 = vcmask 3072  }
  0x9f   : > { %s452_s10 = sshll.u32 %s678_s29, 2 }
  0xa0   : > { %s234_s14 = scalar_lea.vmem %s741_s3, %s452_s10  ;;  %s238_s22 = scalar_lea.vmem %s742_s4, %s452_s10 }
  0xa1   : > { %v284_v9 = vld [vmem:[#allocation2] sm:$0xf] }
  0xa2   : > { %v285_v10 = vsel %vm243_vm0, %v284_v9, 0.0 }
  0xa3   : > { %286 = vadd.xlane.f32.xlu0 %v285_v10  ;;  %v290_v11 = vld [vmem:[#allocation3] sm:$0xf] }
  0xa4   : > { %v291_v12 = vsel %vm243_vm0, %v290_v11, 0.0 }
  0xab   : > { %292 = vadd.xlane.f32.xlu0 %v291_v12 }
 0x116   : > { %v287_v13 = vpop.xlane.xlu0 %286 }
 0x117   : > { %289 = vst.msk [vmem:[%s234_s14] sm:$0xf] %vm288_vm2, %v287_v13 }
 0x11e   : > { %v293_v14 = vpop.xlane.xlu0 %292 }
 0x11f   : > { %294 = vst.msk [vmem:[%s238_s22] sm:$0xf] %vm288_vm2, %v293_v14 }
 0x120 PF: > { %p465_p4 = scmp.ge.s32.totalorder %s593_s20, 2  ;;  %s337_s24 = sand.u32 1, %s573_s15  }
 0x121   : > { %s338_s29 = scalar_lea.sflag [#allocation5], %s337_s24 }
 0x122   : > { %p462_p6 = pnand %p465_p4, %p668_p8 }
 0x124   : > { %p463_p7 = pneg %p462_p6 }
 0x126   : > { %568 = dma.done.wait (%p463_p7), %s338_s29, 64  }
 0x127   : > { %570 = vsyncadd (%p463_p7), %s338_s29, 4294967232  ;;  %s18_s20 = sadd.s32 1, %s593_s20   ;;  %s745_s15 = smov %s577_s16 }
 0x128   : > { %p15_p9 = scmp.ge.s32.totalorder %s18_s20, 4   ;;  %s746_s16 = smov %s581_s17 }
 0x129   : > { %s747_s17 = smov %s674_s28  ;;  %s748_s18 = smov %s589_s19 }
 0x12a   : > { %s749_s19 = smov %s751_s23  ;;  %17 = sbr.rel (!%p15_p9) target bundleno = 4 (0x4), region = 95 }
 0x12f   :  { %358 = vsyncpa [#allocation5], 1 }
 0x130   :  { %360 = vsyncpa [#allocation5 + $0x1], 1 }

</bundles_post_ra>
